<compile_context>
chip_gen: v7x
topology: tpu7x:2x2x1
jax: 0.10.0
libtpu: 0.0.40
codegen_flags: <defaults>
</compile_context>

<pallas_src>
import functools

import jax
import jax.numpy as jnp
from jax.experimental import pallas as pl
from jax.experimental.pallas import tpu as pltpu


# Raises the v5e 16 MiB scoped default, stays within the v7x 32 MiB scoped cap.
_VMEM_LIMIT_BYTES = 32 * 1024 * 1024
_LANES = 128


def _choose_tiles(batch, n_classes):
    """Pick (tile_b, tile_c): ~2-4 MB cosine blocks, >=2 batch tiles if possible."""
    # Class tile: multiple of 128 (or the full, sub-128 class count).
    if n_classes % _LANES == 0:
        tile_c = min(n_classes, 4096)
    elif n_classes > _LANES:
        tile_c = min((n_classes // _LANES) * _LANES, 4096)  # padded last tile masked
    else:
        tile_c = n_classes
    # Batch tile: multiple of 8 (or full batch).  Small batches are split into
    # >=2 tiles so the "parallel" batch axis keeps both v7x TensorCores busy.
    if batch >= 512:
        tile_b = 256
    elif batch > 128:
        tile_b = 128
    elif batch <= 8:
        tile_b = batch
    else:
        half = -(-batch // 2)                         # ceil(batch / 2)
        tile_b = min(batch, ((half + 7) // 8) * 8)    # round up to multiple of 8
    return tile_b, tile_c


def _lane_accumulate(x, acc_width):
    """(tile_b, tile_c) -> (tile_b, acc_width) partial sums.

    acc_width == 128: lane-aligned VPU adds only (no per-step cross-lane XLU
    reduce).  acc_width == 1: plain lane reduce (only used when tile_c is not a
    multiple of 128, i.e. a single class tile).
    """
    if acc_width == 1:
        return jnp.sum(x, axis=1, keepdims=True)
    out = x[:, :acc_width]
    for k in range(1, x.shape[1] // acc_width):
        out = out + x[:, k * acc_width:(k + 1) * acc_width]
    return out


# ---------------------------------------------------------------------------
# Kernel 1 (fused statistics pass, previous scale s_prev):
#   negsum[b_tile] = sum_{rows in tile, classes != label} exp(s_prev * cos)
#   tcos[row]      = cos[row, label[row]]            (free filler: mask reuse)
# ---------------------------------------------------------------------------
def _stats_kernel(s_ref, lab_ref, cos_ref, negsum_ref, tcos_ref,
                  acc_ref, tacc_ref, *, n_rows, n_classes, tile_b, tile_c,
                  acc_width):
    b_idx = pl.program_id(0)
    c_idx = pl.program_id(1)

    @pl.when(c_idx == 0)
    def _init():
        acc_ref[...] = jnp.zeros_like(acc_ref)
        tacc_ref[...] = jnp.zeros_like(tacc_ref)

    s_prev = s_ref[0]
    # Stream the input's native dtype (bf16/f32); all math in f32 (v5e has no
    # bf16 VPU/EUP anyway).
    cos = cos_ref[...].astype(jnp.float32)               # (tile_b, tile_c)
    lab = lab_ref[...]                                   # (tile_b, 1) int32
    col = jax.lax.broadcasted_iota(jnp.int32, cos.shape, 1) + c_idx * tile_c
    is_target = col == lab
    neg_mask = jnp.logical_not(is_target)
    if n_classes % tile_c != 0:                          # static: padded classes
        valid_c = col < n_classes
        neg_mask = jnp.logical_and(neg_mask, valid_c)
        is_target = jnp.logical_and(is_target, valid_c)
    if n_rows % tile_b != 0:                             # static: padded rows
        row = jax.lax.broadcasted_iota(jnp.int32, cos.shape, 0) + b_idx * tile_b
        neg_mask = jnp.logical_and(neg_mask, row < n_rows)
    e = jnp.where(neg_mask, jnp.exp(cos * s_prev), 0.0)
    t = jnp.where(is_target, cos, 0.0)                   # fused target-cos gather
    acc_ref[...] += _lane_accumulate(e, acc_width)
    tacc_ref[...] += _lane_accumulate(t, acc_width)

    @pl.when(c_idx == pl.num_programs(1) - 1)
    def _finalize():
        negsum_ref[...] = jnp.sum(acc_ref[...], keepdims=True).reshape(1, 1, 1)
        tcos_ref[...] = jnp.sum(tacc_ref[...], axis=1, keepdims=True)


def _stats(prev_s_vec, labels2d, cosine, *, tile_b, tile_c):
    B, C = cosine.shape
    nb, nc = pl.cdiv(B, tile_b), pl.cdiv(C, tile_c)
    acc_width = _LANES if tile_c % _LANES == 0 else 1
    kernel = functools.partial(_stats_kernel, n_rows=B, n_classes=C,
                               tile_b=tile_b, tile_c=tile_c, acc_width=acc_width)
    itemsize = jnp.dtype(cosine.dtype).itemsize
    cost = pl.CostEstimate(flops=4 * B * C, transcendentals=B * C,
                           bytes_accessed=B * C * itemsize + 8 * B + 4 * nb)
    return pl.pallas_call(
        kernel,
        out_shape=(jax.ShapeDtypeStruct((nb, 1, 1), jnp.float32),   # neg expsum
                   jax.ShapeDtypeStruct((B, 1), jnp.float32)),      # target cos
        grid=(nb, nc),
        in_specs=[
            pl.BlockSpec(memory_space=pltpu.MemorySpace.SMEM),      # prev_s (1,)
            pl.BlockSpec((tile_b, 1), lambda b, c: (b, 0)),         # labels
            pl.BlockSpec((tile_b, tile_c), lambda b, c: (b, c)),    # cosine (native dtype)
        ],
        out_specs=(pl.BlockSpec((1, 1, 1), lambda b, c: (b, 0, 0)),
                   pl.BlockSpec((tile_b, 1), lambda b, c: (b, 0))),
        scratch_shapes=[pltpu.VMEM((tile_b, acc_width), jnp.float32),
                        pltpu.VMEM((tile_b, acc_width), jnp.float32)],
        compiler_params=pltpu.CompilerParams(
            dimension_semantics=("parallel", "arbitrary"),
            vmem_limit_bytes=_VMEM_LIMIT_BYTES),
        cost_estimate=cost,
    )(prev_s_vec, labels2d, cosine)


# ---------------------------------------------------------------------------
# Kernel 2: per-batch-tile sum of logsumexp(logits) with the *new* scale
#   logits = s * cos (target class: s * (cos - margin))
#   single streaming pass: constant shift s instead of a per-row max reduction
#   (safe because |cos| <= 1 and s <= max_s <= 30).
# ---------------------------------------------------------------------------
def _lse_sum_kernel(s_ref, lab_ref, cos_ref, out_ref, acc_ref, *,
                    n_rows, n_classes, tile_b, tile_c, acc_width, margin):
    b_idx = pl.program_id(0)
    c_idx = pl.program_id(1)

    @pl.when(c_idx == 0)
    def _init():
        acc_ref[...] = jnp.zeros_like(acc_ref)

    s = s_ref[0]
    cos = cos_ref[...].astype(jnp.float32)               # native dtype in HBM
    logits = cos * s
    if margin != 0.0:                 # statically skipped in the default config
        col = jax.lax.broadcasted_iota(jnp.int32, cos.shape, 1) + c_idx * tile_c
        lab = lab_ref[...]
        logits = jnp.where(col == lab, logits - margin * s, logits)
    # |cos| <= 1 and s <= max_s  =>  exp(logits - s) in (0, ~1]: no row-max pass.
    e = jnp.exp(logits - s)
    if n_classes % tile_c != 0:                          # mask padded classes
        col = jax.lax.broadcasted_iota(jnp.int32, cos.shape, 1) + c_idx * tile_c
        e = jnp.where(col < n_classes, e, 0.0)
    if n_rows % tile_b != 0:                             # mask padded rows
        row = jax.lax.broadcasted_iota(jnp.int32, cos.shape, 0) + b_idx * tile_b
        e = jnp.where(row < n_rows, e, 0.0)
    acc_ref[...] += _lane_accumulate(e, acc_width)

    @pl.when(c_idx == pl.num_programs(1) - 1)
    def _finalize():
        row_sum = acc_ref[...]
        if acc_width != 1:
            row_sum = jnp.sum(row_sum, axis=1, keepdims=True)
        per_row = s + jnp.log(row_sum)                   # (tile_b, 1) logsumexp
        if n_rows % tile_b != 0:
            row = jax.lax.broadcasted_iota(jnp.int32, per_row.shape, 0) + b_idx * tile_b
            per_row = jnp.where(row < n_rows, per_row, 0.0)
        out_ref[...] = jnp.sum(per_row, keepdims=True).reshape(1, 1, 1)


def _lse_sum(s_vec, labels2d, cosine, *, tile_b, tile_c, margin):
    B, C = cosine.shape
    nb, nc = pl.cdiv(B, tile_b), pl.cdiv(C, tile_c)
    acc_width = _LANES if tile_c % _LANES == 0 else 1
    kernel = functools.partial(_lse_sum_kernel, n_rows=B, n_classes=C,
                               tile_b=tile_b, tile_c=tile_c,
                               acc_width=acc_width, margin=float(margin))
    itemsize = jnp.dtype(cosine.dtype).itemsize
    cost = pl.CostEstimate(flops=3 * B * C, transcendentals=B * C,
                           bytes_accessed=B * C * itemsize + 4 * B + 4 * nb)
    return pl.pallas_call(
        kernel,
        out_shape=jax.ShapeDtypeStruct((nb, 1, 1), jnp.float32),
        grid=(nb, nc),
        in_specs=[
            pl.BlockSpec(memory_space=pltpu.MemorySpace.SMEM),      # s (1,)
            pl.BlockSpec((tile_b, 1), lambda b, c: (b, 0)),         # labels
            pl.BlockSpec((tile_b, tile_c), lambda b, c: (b, c)),    # cosine (native dtype)
        ],
        out_specs=pl.BlockSpec((1, 1, 1), lambda b, c: (b, 0, 0)),
        scratch_shapes=[pltpu.VMEM((tile_b, acc_width), jnp.float32)],
        compiler_params=pltpu.CompilerParams(
            dimension_semantics=("parallel", "arbitrary"),
            vmem_limit_bytes=_VMEM_LIMIT_BYTES),
        cost_estimate=cost,
    )(s_vec, labels2d, cosine)


# ---------------------------------------------------------------------------
# One fully on-device training-step (jitted): stats -> median/EMA/s -> loss.
# ---------------------------------------------------------------------------
def _adacos_step(cosine, labels, running_B, running_cos, prev_s, *,
                 margin, momentum, max_s, fixed_s):
    B, C = cosine.shape
    tile_b, tile_c = _choose_tiles(B, C)
    labels2d = labels.reshape(B, 1).astype(jnp.int32)
    prev_s_vec = jnp.reshape(prev_s, (1,)).astype(jnp.float32)
    inv_B = 1.0 / B                                      # compile-time constant

    # ---- statistics (torch.no_grad() block): neg expsum + target cos, fused ----
    neg_parts, tcos2d = _stats(prev_s_vec, labels2d, cosine,
                               tile_b=tile_b, tile_c=tile_c)
    B_batch = jnp.sum(neg_parts) * inv_B
    tcos = tcos2d[:, 0]                                  # (B,) f32 target cosines
    med_cos = jnp.sort(tcos)[(B - 1) // 2]               # torch.median = lower median

    running_B_new = running_B * momentum + B_batch * (1.0 - momentum)
    running_cos_new = running_cos * momentum + med_cos * (1.0 - momentum)
    s_new = jnp.log(running_B_new) / (jnp.maximum(running_cos_new, 0.7) - margin)
    s_new = jnp.minimum(s_new, max_s)

    s_used = jnp.asarray(fixed_s, jnp.float32) if fixed_s is not None else s_new
    s_vec = jnp.reshape(s_used, (1,)).astype(jnp.float32)

    # ---- margin + scale + soft-target cross-entropy (hard labels) ----
    lse_parts = _lse_sum(s_vec, labels2d, cosine,
                         tile_b=tile_b, tile_c=tile_c, margin=margin)
    loss = (jnp.sum(lse_parts) - s_used * jnp.sum(tcos - margin)) * inv_B
    return loss, running_B_new, running_cos_new, s_new


class AdaCosPallas:
    """AdaCos head; final_criterion assumed = soft-target cross-entropy."""

    def __init__(self, margin=0.0, max_s=20.0, fixed_s=None, momentum=0.95):
        self.margin = float(margin)
        self.momentum = float(momentum)
        self.max_s = float(max_s)
        self.fixed_s = None if fixed_s is None else float(fixed_s)
        self.eps = 1e-7      # only used by the (unimplemented) arc_logits branch
        self.idx = 0
        # The loss kernel's constant-shift logsumexp relies on s <= ~30 so that
        # exp(s*(cos-1)) stays in normal f32 range (|cos| <= 1).
        s_bound = self.max_s if self.fixed_s is None else max(self.max_s, self.fixed_s)
        assert s_bound <= 30.0, (
            "AdaCosPallas: constant-shift logsumexp requires max_s/fixed_s <= 30")
        # Running buffers live as device scalars -> no host syncs per step.
        self.running_B = jnp.asarray(1000.0, jnp.float32)
        self.running_cos = jnp.asarray(0.7, jnp.float32)
        self.prev_s = jnp.asarray(self.max_s, jnp.float32)  # matches PyTorch init
        self._step = jax.jit(functools.partial(
            _adacos_step, margin=self.margin, momentum=self.momentum,
            max_s=self.max_s, fixed_s=self.fixed_s))

    def __call__(self, cosine, y_true):
        cosine = jnp.asarray(cosine)   # streamed in its native dtype (bf16/f32)
        y_true = jnp.asarray(y_true)
        if y_true.ndim == 1:
            labels = y_true.astype(jnp.int32)
        else:
            # one-hot / soft targets -> hard labels (matches torch argmax path).
            labels = jnp.argmax(y_true, axis=-1).astype(jnp.int32)
        loss, self.running_B, self.running_cos, self.prev_s = self._step(
            cosine, labels, self.running_B, self.running_cos, self.prev_s)
        self.idx += 1
        return loss


# ---------------------------------------------------------------------------
# Pure-JAX reference of a single step (for a self-check in __main__).
# ---------------------------------------------------------------------------
def _reference_loss(cosine, labels, running_B, running_cos, prev_s,
                    margin, momentum, max_s, fixed_s):
    cosine = cosine.astype(jnp.float32)
    B, C = cosine.shape
    one_hot = jax.nn.one_hot(labels, C, dtype=jnp.float32)
    neg = one_hot == 0.0
    B_batch = jnp.sum(jnp.where(neg, jnp.exp(cosine * prev_s), 0.0)) / B
    tcos = jnp.take_along_axis(cosine, labels[:, None], axis=1)[:, 0]
    med = jnp.sort(tcos)[(B - 1) // 2]
    rB = running_B * momentum + B_batch * (1.0 - momentum)
    rc = running_cos * momentum + med * (1.0 - momentum)
    s = jnp.minimum(jnp.log(rB) / (jnp.maximum(rc, 0.7) - margin), max_s)
    s_used = s if fixed_s is None else jnp.asarray(fixed_s, jnp.float32)
    logits = jnp.where(neg, cosine, cosine - margin) * s_used
    lse = jax.nn.logsumexp(logits, axis=1)
    return jnp.mean(lse - jnp.sum(one_hot * logits, axis=1))


if __name__ == "__main__":
    key = jax.random.PRNGKey(0)
    B, C = 8, 256  # batch x num_classes (vreg-aligned small demo shapes)

    k1, k2 = jax.random.split(key)
    cosine = jnp.tanh(jax.random.normal(k1, (B, C), dtype=jnp.float32))
    labels = jax.random.randint(k2, (B,), 0, C, dtype=jnp.int32)

    module = AdaCosPallas(margin=0.0, max_s=20.0, fixed_s=None, momentum=0.95)

    ref = _reference_loss(cosine, labels, 1000.0, 0.7, 20.0,
                          margin=0.0, momentum=0.95, max_s=20.0, fixed_s=None)
    loss = module(cosine, labels)
    jax.block_until_ready(loss)
    assert jnp.allclose(loss, ref, rtol=2e-3, atol=2e-3), (loss, ref)

    # Second step: bf16 cosine streamed in its native dtype + one-hot labels
    # (exercises the in-kernel cast path, the argmax label path and the
    # on-device running-stat update).
    loss2 = module(cosine.astype(jnp.bfloat16),
                   jax.nn.one_hot(labels, C, dtype=jnp.float32))
    jax.block_until_ready(loss2)
    assert bool(jnp.isfinite(loss2))

    print("KERNEL_OK")
</pallas_src>

<mosaic_0001>
module attributes {stable_mosaic.version = 11 : i64} {
  func.func @_stats_kernel(%arg0: i32, %arg1: i32, %arg2: memref<1xf32, #tpu.memory_space<smem>>, %arg3: memref<8x1xi32, #tpu.memory_space<vmem>>, %arg4: memref<8x256xf32, #tpu.memory_space<vmem>>, %arg5: memref<1x1x1xf32, #tpu.memory_space<vmem>>, %arg6: memref<8x1xf32, #tpu.memory_space<vmem>>, %arg7: memref<8x128xf32, #tpu.memory_space<vmem>>, %arg8: memref<8x128xf32, #tpu.memory_space<vmem>>) attributes {dimension_semantics = [#tpu.dimension_semantics<parallel>, #tpu.dimension_semantics<arbitrary>], iteration_bounds = array<i64: 1, 1>, scalar_prefetch = 0 : i64, scratch_operands = 2 : i64, tpu.core_type = #tpu.core_type<tc>, window_params = [{transform_indices = @transform_0, window_bounds = array<i64: 1>}, {transform_indices = @transform_1, window_bounds = array<i64: 8, 1>}, {transform_indices = @transform_2, window_bounds = array<i64: 8, 256>}, {transform_indices = @transform_3, window_bounds = array<i64: 1, 1, 1>}, {transform_indices = @transform_4, window_bounds = array<i64: 8, 1>}]} {
    %c0_i32 = arith.constant 0 : i32
    %0 = arith.cmpi eq, %arg1, %c0_i32 : i32
    %1 = arith.extui %0 : i1 to i32
    %c0_i32_0 = arith.constant 0 : i32
    %2 = arith.cmpi ne, %1, %c0_i32_0 : i32
    scf.if %2 {
      %cst_17 = arith.constant 0.000000e+00 : f32
      %35 = vector.broadcast %cst_17 : f32 to vector<8x128xf32>
      %c0_18 = arith.constant 0 : index
      %c0_19 = arith.constant 0 : index
      %36 = vector.load %arg7[%c0_18, %c0_19] : memref<8x128xf32, #tpu.memory_space<vmem>>, vector<8x128xf32>
      tpu.vector_store %arg7[%c0_18, %c0_19], %35 {strides = array<i32>} : memref<8x128xf32, #tpu.memory_space<vmem>>, vector<8x128xf32>,
      %cst_20 = arith.constant 0.000000e+00 : f32
      %37 = vector.broadcast %cst_20 : f32 to vector<8x128xf32>
      %c0_21 = arith.constant 0 : index
      %c0_22 = arith.constant 0 : index
      %38 = vector.load %arg8[%c0_21, %c0_22] : memref<8x128xf32, #tpu.memory_space<vmem>>, vector<8x128xf32>
      tpu.vector_store %arg8[%c0_21, %c0_22], %37 {strides = array<i32>} : memref<8x128xf32, #tpu.memory_space<vmem>>, vector<8x128xf32>,
    } else {
    }
    %c0 = arith.constant 0 : index
    %3 = memref.load %arg2[%c0] : memref<1xf32, #tpu.memory_space<smem>>
    %c0_1 = arith.constant 0 : index
    %c0_2 = arith.constant 0 : index
    %4 = vector.load %arg4[%c0_1, %c0_2] : memref<8x256xf32, #tpu.memory_space<vmem>>, vector<8x256xf32>
    %c0_3 = arith.constant 0 : index
    %c0_4 = arith.constant 0 : index
    %5 = vector.load %arg3[%c0_3, %c0_4] : memref<8x1xi32, #tpu.memory_space<vmem>>, vector<8x1xi32>
    %6 = tpu.iota {dimensions = array<i32: 1>} : vector<8x256xi32>
    %c256_i32 = arith.constant 256 : i32
    %7 = arith.muli %arg1, %c256_i32 : i32
    %8 = vector.broadcast %7 : i32 to vector<8x256xi32>
    %9 = arith.addi %6, %8 : vector<8x256xi32>
    %10 = vector.broadcast %5 : vector<8x1xi32> to vector<8x256xi32>
    %11 = arith.cmpi eq, %9, %10 : vector<8x256xi32>
    %cst = arith.constant dense<true> : vector<8x256xi1>
    %12 = arith.xori %11, %cst : vector<8x256xi1>
    %13 = vector.broadcast %3 : f32 to vector<8x256xf32>
    %14 = arith.mulf %4, %13 : vector<8x256xf32>
    %15 = math.exp %14 : vector<8x256xf32>
    %cst_5 = arith.constant 0.000000e+00 : f32
    %16 = vector.broadcast %cst_5 : f32 to vector<8x256xf32>
    %17 = arith.select %12, %15, %16 : vector<8x256xi1>, vector<8x256xf32>
    %cst_6 = arith.constant 0.000000e+00 : f32
    %18 = vector.broadcast %cst_6 : f32 to vector<8x256xf32>
    %19 = arith.select %11, %4, %18 : vector<8x256xi1>, vector<8x256xf32>
    %c0_7 = arith.constant 0 : index
    %c0_8 = arith.constant 0 : index
    %20 = vector.load %arg7[%c0_7, %c0_8] : memref<8x128xf32, #tpu.memory_space<vmem>>, vector<8x128xf32>
    %21 = vector.extract_strided_slice %17 {offsets = [0, 0], sizes = [8, 128], strides = [1, 1]} : vector<8x256xf32> to vector<8x128xf32>
    %22 = vector.extract_strided_slice %17 {offsets = [0, 128], sizes = [8, 128], strides = [1, 1]} : vector<8x256xf32> to vector<8x128xf32>
    %23 = arith.addf %21, %22 : vector<8x128xf32>
    %24 = arith.addf %20, %23 : vector<8x128xf32>
    %c0_9 = arith.constant 0 : index
    %c0_10 = arith.constant 0 : index
    %25 = vector.load %arg7[%c0_9, %c0_10] : memref<8x128xf32, #tpu.memory_space<vmem>>, vector<8x128xf32>
    tpu.vector_store %arg7[%c0_9, %c0_10], %24 {strides = array<i32>} : memref<8x128xf32, #tpu.memory_space<vmem>>, vector<8x128xf32>,
    %c0_11 = arith.constant 0 : index
    %c0_12 = arith.constant 0 : index
    %26 = vector.load %arg8[%c0_11, %c0_12] : memref<8x128xf32, #tpu.memory_space<vmem>>, vector<8x128xf32>
    %27 = vector.extract_strided_slice %19 {offsets = [0, 0], sizes = [8, 128], strides = [1, 1]} : vector<8x256xf32> to vector<8x128xf32>
    %28 = vector.extract_strided_slice %19 {offsets = [0, 128], sizes = [8, 128], strides = [1, 1]} : vector<8x256xf32> to vector<8x128xf32>
    %29 = arith.addf %27, %28 : vector<8x128xf32>
    %30 = arith.addf %26, %29 : vector<8x128xf32>
    %c0_13 = arith.constant 0 : index
    %c0_14 = arith.constant 0 : index
    %31 = vector.load %arg8[%c0_13, %c0_14] : memref<8x128xf32, #tpu.memory_space<vmem>>, vector<8x128xf32>
    tpu.vector_store %arg8[%c0_13, %c0_14], %30 {strides = array<i32>} : memref<8x128xf32, #tpu.memory_space<vmem>>, vector<8x128xf32>,
    %c0_i32_15 = arith.constant 0 : i32
    %32 = arith.cmpi eq, %arg1, %c0_i32_15 : i32
    %33 = arith.extui %32 : i1 to i32
    %c0_i32_16 = arith.constant 0 : i32
    %34 = arith.cmpi ne, %33, %c0_i32_16 : i32
    scf.if %34 {
      %c0_17 = arith.constant 0 : index
      %c0_18 = arith.constant 0 : index
      %35 = vector.load %arg7[%c0_17, %c0_18] : memref<8x128xf32, #tpu.memory_space<vmem>>, vector<8x128xf32>
      %36 = vector.shape_cast %35 : vector<8x128xf32> to vector<1x8x128xf32>
      %cst_19 = arith.constant dense<0.000000e+00> : vector<1xf32>
      %37 = vector.multi_reduction <add>, %36, %cst_19 [1, 2] : vector<1x8x128xf32> to vector<1xf32>
      %38 = vector.shape_cast %37 : vector<1xf32> to vector<1x1x1xf32>
      %39 = vector.extract %38[0, 0, 0] : f32 from vector<1x1x1xf32>
      %40 = vector.broadcast %39 : f32 to vector<1x1xf32>
      %41 = vector.shape_cast %40 : vector<1x1xf32> to vector<1x1x1xf32>
      %c0_20 = arith.constant 0 : index
      %c0_21 = arith.constant 0 : index
      %c0_22 = arith.constant 0 : index
      %42 = vector.load %arg5[%c0_20, %c0_21, %c0_22] : memref<1x1x1xf32, #tpu.memory_space<vmem>>, vector<1x1x1xf32>
      tpu.vector_store %arg5[%c0_20, %c0_21, %c0_22], %41 {strides = array<i32>} : memref<1x1x1xf32, #tpu.memory_space<vmem>>, vector<1x1x1xf32>,
      %c0_23 = arith.constant 0 : index
      %c0_24 = arith.constant 0 : index
      %43 = vector.load %arg8[%c0_23, %c0_24] : memref<8x128xf32, #tpu.memory_space<vmem>>, vector<8x128xf32>
      %cst_25 = arith.constant dense<0.000000e+00> : vector<8xf32>
      %44 = vector.multi_reduction <add>, %43, %cst_25 [1] : vector<8x128xf32> to vector<8xf32>
      %45 = vector.shape_cast %44 : vector<8xf32> to vector<8x1xf32>
      %c0_26 = arith.constant 0 : index
      %c0_27 = arith.constant 0 : index
      %46 = vector.load %arg6[%c0_26, %c0_27] : memref<8x1xf32, #tpu.memory_space<vmem>>, vector<8x1xf32>
      tpu.vector_store %arg6[%c0_26, %c0_27], %45 {strides = array<i32>} : memref<8x1xf32, #tpu.memory_space<vmem>>, vector<8x1xf32>,
    } else {
    }
    return
  }
  func.func @transform_0(%arg0: i32, %arg1: i32) -> i32 {
    %c0_i32 = arith.constant 0 : i32
    %c0_i32_0 = arith.constant 0 : i32
    return %c0_i32 : i32
  }
  func.func @transform_1(%arg0: i32, %arg1: i32) -> (i32, i32) {
    %c0_i32 = arith.constant 0 : i32
    %c0_i32_0 = arith.constant 0 : i32
    return %arg0, %c0_i32 : i32, i32
  }
  func.func @transform_2(%arg0: i32, %arg1: i32) -> (i32, i32) {
    %c0_i32 = arith.constant 0 : i32
    return %arg0, %arg1 : i32, i32
  }
  func.func @transform_3(%arg0: i32, %arg1: i32) -> (i32, i32, i32) {
    %c0_i32 = arith.constant 0 : i32
    %c0_i32_0 = arith.constant 0 : i32
    %c0_i32_1 = arith.constant 0 : i32
    return %arg0, %c0_i32, %c0_i32_0 : i32, i32, i32
  }
  func.func @transform_4(%arg0: i32, %arg1: i32) -> (i32, i32) {
    %c0_i32 = arith.constant 0 : i32
    %c0_i32_0 = arith.constant 0 : i32
    return %arg0, %c0_i32 : i32, i32
  }
}

module attributes {stable_mosaic.version = 11 : i64} {
  func.func @_lse_sum_kernel(%arg0: i32, %arg1: i32, %arg2: memref<1xf32, #tpu.memory_space<smem>>, %arg3: memref<8x1xi32, #tpu.memory_space<vmem>>, %arg4: memref<8x256xf32, #tpu.memory_space<vmem>>, %arg5: memref<1x1x1xf32, #tpu.memory_space<vmem>>, %arg6: memref<8x128xf32, #tpu.memory_space<vmem>>) attributes {dimension_semantics = [#tpu.dimension_semantics<parallel>, #tpu.dimension_semantics<arbitrary>], iteration_bounds = array<i64: 1, 1>, scalar_prefetch = 0 : i64, scratch_operands = 1 : i64, tpu.core_type = #tpu.core_type<tc>, window_params = [{transform_indices = @transform_0, window_bounds = array<i64: 1>}, {transform_indices = @transform_1, window_bounds = array<i64: 8, 1>}, {transform_indices = @transform_2, window_bounds = array<i64: 8, 256>}, {transform_indices = @transform_3, window_bounds = array<i64: 1, 1, 1>}]} {
    %c0_i32 = arith.constant 0 : i32
    %0 = arith.cmpi eq, %arg1, %c0_i32 : i32
    %1 = arith.extui %0 : i1 to i32
    %c0_i32_0 = arith.constant 0 : i32
    %2 = arith.cmpi ne, %1, %c0_i32_0 : i32
    scf.if %2 {
      %cst = arith.constant 0.000000e+00 : f32
      %19 = vector.broadcast %cst : f32 to vector<8x128xf32>
      %c0_9 = arith.constant 0 : index
      %c0_10 = arith.constant 0 : index
      %20 = vector.load %arg6[%c0_9, %c0_10] : memref<8x128xf32, #tpu.memory_space<vmem>>, vector<8x128xf32>
      tpu.vector_store %arg6[%c0_9, %c0_10], %19 {strides = array<i32>} : memref<8x128xf32, #tpu.memory_space<vmem>>, vector<8x128xf32>,
    } else {
    }
    %c0 = arith.constant 0 : index
    %3 = memref.load %arg2[%c0] : memref<1xf32, #tpu.memory_space<smem>>
    %c0_1 = arith.constant 0 : index
    %c0_2 = arith.constant 0 : index
    %4 = vector.load %arg4[%c0_1, %c0_2] : memref<8x256xf32, #tpu.memory_space<vmem>>, vector<8x256xf32>
    %5 = vector.broadcast %3 : f32 to vector<8x256xf32>
    %6 = arith.mulf %4, %5 : vector<8x256xf32>
    %7 = vector.broadcast %3 : f32 to vector<8x256xf32>
    %8 = arith.subf %6, %7 : vector<8x256xf32>
    %9 = math.exp %8 : vector<8x256xf32>
    %c0_3 = arith.constant 0 : index
    %c0_4 = arith.constant 0 : index
    %10 = vector.load %arg6[%c0_3, %c0_4] : memref<8x128xf32, #tpu.memory_space<vmem>>, vector<8x128xf32>
    %11 = vector.extract_strided_slice %9 {offsets = [0, 0], sizes = [8, 128], strides = [1, 1]} : vector<8x256xf32> to vector<8x128xf32>
    %12 = vector.extract_strided_slice %9 {offsets = [0, 128], sizes = [8, 128], strides = [1, 1]} : vector<8x256xf32> to vector<8x128xf32>
    %13 = arith.addf %11, %12 : vector<8x128xf32>
    %14 = arith.addf %10, %13 : vector<8x128xf32>
    %c0_5 = arith.constant 0 : index
    %c0_6 = arith.constant 0 : index
    %15 = vector.load %arg6[%c0_5, %c0_6] : memref<8x128xf32, #tpu.memory_space<vmem>>, vector<8x128xf32>
    tpu.vector_store %arg6[%c0_5, %c0_6], %14 {strides = array<i32>} : memref<8x128xf32, #tpu.memory_space<vmem>>, vector<8x128xf32>,
    %c0_i32_7 = arith.constant 0 : i32
    %16 = arith.cmpi eq, %arg1, %c0_i32_7 : i32
    %17 = arith.extui %16 : i1 to i32
    %c0_i32_8 = arith.constant 0 : i32
    %18 = arith.cmpi ne, %17, %c0_i32_8 : i32
    scf.if %18 {
      %c0_9 = arith.constant 0 : index
      %c0_10 = arith.constant 0 : index
      %19 = vector.load %arg6[%c0_9, %c0_10] : memref<8x128xf32, #tpu.memory_space<vmem>>, vector<8x128xf32>
      %cst = arith.constant dense<0.000000e+00> : vector<8xf32>
      %20 = vector.multi_reduction <add>, %19, %cst [1] : vector<8x128xf32> to vector<8xf32>
      %21 = vector.shape_cast %20 : vector<8xf32> to vector<8x1xf32>
      %22 = math.log %21 : vector<8x1xf32>
      %23 = vector.broadcast %3 : f32 to vector<8x1xf32>
      %24 = arith.addf %23, %22 : vector<8x1xf32>
      %25 = vector.shape_cast %24 : vector<8x1xf32> to vector<1x8x1xf32>
      %cst_11 = arith.constant dense<0.000000e+00> : vector<1xf32>
      %26 = vector.multi_reduction <add>, %25, %cst_11 [1, 2] : vector<1x8x1xf32> to vector<1xf32>
      %27 = vector.shape_cast %26 : vector<1xf32> to vector<1x1x1xf32>
      %28 = vector.extract %27[0, 0, 0] : f32 from vector<1x1x1xf32>
      %29 = vector.broadcast %28 : f32 to vector<1x1xf32>
      %30 = vector.shape_cast %29 : vector<1x1xf32> to vector<1x1x1xf32>
      %c0_12 = arith.constant 0 : index
      %c0_13 = arith.constant 0 : index
      %c0_14 = arith.constant 0 : index
      %31 = vector.load %arg5[%c0_12, %c0_13, %c0_14] : memref<1x1x1xf32, #tpu.memory_space<vmem>>, vector<1x1x1xf32>
      tpu.vector_store %arg5[%c0_12, %c0_13, %c0_14], %30 {strides = array<i32>} : memref<1x1x1xf32, #tpu.memory_space<vmem>>, vector<1x1x1xf32>,
    } else {
    }
    return
  }
  func.func @transform_0(%arg0: i32, %arg1: i32) -> i32 {
    %c0_i32 = arith.constant 0 : i32
    %c0_i32_0 = arith.constant 0 : i32
    return %c0_i32 : i32
  }
  func.func @transform_1(%arg0: i32, %arg1: i32) -> (i32, i32) {
    %c0_i32 = arith.constant 0 : i32
    %c0_i32_0 = arith.constant 0 : i32
    return %arg0, %c0_i32 : i32, i32
  }
  func.func @transform_2(%arg0: i32, %arg1: i32) -> (i32, i32) {
    %c0_i32 = arith.constant 0 : i32
    return %arg0, %arg1 : i32, i32
  }
  func.func @transform_3(%arg0: i32, %arg1: i32) -> (i32, i32, i32) {
    %c0_i32 = arith.constant 0 : i32
    %c0_i32_0 = arith.constant 0 : i32
    %c0_i32_1 = arith.constant 0 : i32
    return %arg0, %c0_i32, %c0_i32_0 : i32, i32, i32
  }
}

</mosaic_0001>

<bundles_post_ra>
// kernel: _adacos_step.2
= control target key start
LH: loop header
LB: loop body
LE: loop exit
PB: predicated region body
PF: predicated region fallthrough
CT: control target
= control target key end

     0   :  { %v134_v1 = vmov 0   ;;  %s189_s0 = inlined_call_operand.<no memory space> [shape: f32[1], index: 0, kind: input, shape index: {}]   ;;  %s190_s1 = inlined_call_operand.vmem [shape: s32[8,1], index: 1, kind: input, shape index: {}]   ;;  %s191_s2 = inlined_call_operand.vmem [shape: f32[8,256], index: 2, kind: input, shape index: {}]   ;;  %s192_s3 = inlined_call_operand.hbm [shape: f32[1,1,1], index: 3, kind: output, shape index: {0}]   ;;  %s193_s4 = inlined_call_operand.vmem [shape: f32[8,1], index: 4, kind: output, shape index: {1}]  }
   0x1   :  { %v27_v0 = vld [vmem:[%s190_s1] sm:$0xff]  ;;  %105 = vset.pattern.permute.xlu0 %v134_v1 }
   0x2   :  { %11 = vsyncpa [#allocation6], 0  ;;  %36 = vperm.xlu0 %105, %v27_v0   ;;  %v25_v2 = vld [vmem:[%s191_s2] sm:$0xff]  ;;  %v42_v3 = vstv %s189_s0  ;;  %v26_v4 = vld [vmem:[%s191_s2 + $0x8] sm:$0xff]  ;;  %v28_v9 = vlaneseq  ;;  %vm135_vm2 = vmmov 1   ;;  %vm80_vm5 = vcmask 7168  }
   0x3   :  { %v43_v5 = vmul.f32 %v42_v3, %v25_v2  ;;  %v44_v6 = vmul.f32 %v42_v3, %v26_v4  ;;  %s136_s2 = smov [#allocation5]   ;;  %vm75_vm6 = vcmask 0  }
   0x4   :  { %v29_v10 = vand.u32 127, %v28_v9  ;;  %s88_s23 = sshll.u32 %s136_s2, 4  ;;  %s89_s23 = int_to_ptr.vmem [resolvable:$true] %s88_s23 }
   0x5   :  { %v45_v7 = vmul.f32 1.442695, %v43_v5  ;;  %v47_v8 = vmul.f32 1.442695, %v44_v6  ;;  %s110_s25 = scalar_lea.vmem %s89_s23, 16  ;;  %s114_s26 = scalar_lea.vmem %s89_s23, 32 }
   0x6   :  { %v30_v11 = vadd.s32 128, %v29_v10  ;;  %p111_p0 = scmp.ne.s32.totalorder %s89_s23, %s110_s25  ;;  %p115_p1 = scmp.lt.s32.totalorder %s89_s23, %s89_s23 }
   0x7   :  { %106 = vpow2.f32 %v45_v7  ;;  %p116_p2 = scmp.lt.s32.totalorder %s114_s26, %s110_s25 }
   0x8   :  { %108 = vpow2.f32 %v47_v8 }
   0x9   :  { %p117_p3 = por %p116_p2, %p115_p1 }
   0xb   :  { %p118_p4 = pnand %p117_p3, %p111_p0 }
  0x11   :  { %v107_v12 = vpop.eup %106 }
  0x12   :  { %v109_v14 = vpop.eup %108 }
  0x81   :  { %v37_v13 = vpop.permute.xlu0 %36 }
  0x82   :  { %vm38_vm0 = vcmp.eq.s32.totalorder %v29_v10, %v37_v13  ;;  %vm39_vm1 = vcmp.eq.s32.totalorder %v30_v11, %v37_v13 }
  0x83   :  { %vm40_vm3 = vmxor %vm38_vm0, %vm135_vm2  ;;  %v51_v15 = vsel %vm38_vm0, %v25_v2, 0.0  ;;  %v52_v16 = vsel %vm39_vm1, %v26_v4, 0.0 }
  0x84   :  { %vm41_vm4 = vmxor %vm39_vm1, %vm135_vm2  ;;  %v58_v17 = vadd.f32 %v52_v16, %v51_v15  ;;  %v49_v18 = vsel %vm40_vm3, %v107_v12, 0.0 }
  0x85   :  { %v50_v19 = vsel %vm41_vm4, %v109_v14, 0.0 }
  0x86   :  { %78 = vadd.xlane.f32.xlu1 %v58_v17  ;;  %v54_v20 = vadd.f32 %v50_v19, %v49_v18 }
  0x88   :  { %65 = vadd.xlane.f32.xlu0 %v54_v20 }
 0x113   :  { %v79_v21 = vpop.xlane.xlu1 %78 }
 0x114   :  { %81 = vst.msk [vmem:[%s193_s4] sm:$0xff] %vm80_vm5, %v79_v21 }
 0x115   :  { %v66_v22 = vpop.xlane.xlu0 %65 }
 0x116   :  { %v67_v23 = vrot.slane %v66_v22, 4 }
 0x118   :  { %v68_v24 = vadd.f32 %v67_v23, %v66_v22 }
 0x11a   :  { %v69_v25 = vrot.slane %v68_v24, 2 }
 0x11c   :  { %v70_v26 = vadd.f32 %v69_v25, %v68_v24 }
 0x11e   :  { %v71_v27 = vrot.slane %v70_v26, 1 }
 0x120   :  { %v72_v28 = vadd.f32 %v71_v27, %v70_v26 }
 0x122   :  { %100 = vpush %v72_v28 }
 0x153   :  { %s101_s24 = spop %100 }
 0x154   :  { %v74_v29 = vstv %s101_s24 }
 0x155   :  { %76 = vst.msk [vmem:[#allocation5] sm:$0x1] %vm75_vm6, %v74_v29 }
 0x156   :  { %121 = shalt.err (!%p118_p4)
}
 0x157   :  { %s122_s28 = scalar_lea.hbm %s192_s3, 16 }
 0x158   :  { %p123_p5 = scmp.ne.s32.totalorder %s192_s3, %s122_s28  ;;  %p126_p6 = scmp.lt.u32.totalorder %s122_s28, %s192_s3 }
 0x15a   :  { %p128_p7 = pnand %p126_p6, %p123_p5 }
 0x15c   :  { %131 = shalt.err (!%p128_p7)
}
 0x15d   :  { %91 = dma.vmem_to_hbm [thread:$0]  %s89_s23, 16, %s192_s3, [#allocation6]  }
 0x15e   :  { %132 = dma.done.wait [#allocation6], 16  }
 0x15f   :  { %133 = vsyncadd [#allocation6], 4294967280 }
 0x160   :  { %99 = vsyncpa [#allocation6], 1 }

// kernel: _adacos_step.3
= control target key start
LH: loop header
LB: loop body
LE: loop exit
PB: predicated region body
PF: predicated region fallthrough
CT: control target
= control target key end

     0   :  { %s149_s0 = inlined_call_operand.<no memory space> [shape: f32[1], index: 0, kind: input, shape index: {}]   ;;  %s150_s1 = inlined_call_operand.vmem [shape: s32[8,1], index: 1, kind: input, shape index: {}]   ;;  %s151_s2 = inlined_call_operand.vmem [shape: f32[8,256], index: 2, kind: input, shape index: {}]   ;;  %s152_s3 = inlined_call_operand.hbm [shape: f32[1,1,1], index: 3, kind: output, shape index: {}]  }
   0x1   :  { %v22_v0 = vld [vmem:[%s151_s2] sm:$0xff]  ;;  %v23_v1 = vld [vmem:[%s151_s2 + $0x8] sm:$0xff]  ;;  %v24_v2 = vstv %s149_s0 }
   0x2   :  { %9 = vsyncpa [#allocation5], 0  ;;  %v25_v3 = vmul.f32 %v24_v2, %v22_v0  ;;  %v26_v4 = vmul.f32 %v24_v2, %v23_v1  ;;  %vm46_vm0 = vcmask 7168   ;;  %s107_s0 = smov [#allocation4]   ;;  %vm58_vm1 = vcmask 0  }
   0x3   :  { %s66_s1 = sshll.u32 %s107_s0, 4  ;;  %s67_s1 = int_to_ptr.vmem [resolvable:$true] %s66_s1 }
   0x4   :  { %v27_v5 = vsub.f32 %v25_v3, %v24_v2  ;;  %v28_v6 = vsub.f32 %v26_v4, %v24_v2  ;;  %s83_s18 = scalar_lea.vmem %s67_s1, 16  ;;  %s87_s19 = scalar_lea.vmem %s67_s1, 32 }
   0x5   :  { %p84_p0 = scmp.ne.s32.totalorder %s67_s1, %s83_s18  ;;  %p88_p1 = scmp.lt.s32.totalorder %s67_s1, %s67_s1 }
   0x6   :  { %v29_v7 = vmul.f32 1.442695, %v27_v5  ;;  %v31_v8 = vmul.f32 1.442695, %v28_v6  ;;  %p89_p2 = scmp.lt.s32.totalorder %s87_s19, %s83_s18 }
   0x8   :  { %77 = vpow2.f32 %v29_v7  ;;  %p90_p3 = por %p89_p2, %p88_p1 }
   0x9   :  { %79 = vpow2.f32 %v31_v8 }
   0xa   :  { %p91_p4 = pnand %p90_p3, %p84_p0 }
  0x12   :  { %v78_v9 = vpop.eup %77 }
  0x13   :  { %v80_v10 = vpop.eup %79 }
  0x14   :  { %v34_v11 = vadd.f32 %v80_v10, %v78_v9 }
  0x16   :  { %41 = vadd.xlane.f32.xlu0 %v34_v11 }
  0xa3   :  { %v42_v12 = vpop.xlane.xlu0 %41 }
  0xa4   :  { %81 = vlog2.f32 %v42_v12 }
  0xae   :  { %v82_v13 = vpop.eup %81 }
  0xaf   :  { %v44_v14 = vmul.f32 0.6931472, %v82_v13 }
  0xb1   :  { %v45_v15 = vadd.f32 %v44_v14, %v24_v2 }
  0xb3   :  { %v47_v16 = vsel %vm46_vm0, %v45_v15, 0.0 }
  0xb4   :  { %48 = vadd.xlane.f32.xlu0 %v47_v16 }
 0x141   :  { %v49_v17 = vpop.xlane.xlu0 %48 }
 0x142   :  { %v50_v18 = vrot.slane %v49_v17, 4 }
 0x144   :  { %v51_v19 = vadd.f32 %v50_v18, %v49_v17 }
 0x146   :  { %v52_v20 = vrot.slane %v51_v19, 2 }
 0x148   :  { %v53_v21 = vadd.f32 %v52_v20, %v51_v19 }
 0x14a   :  { %v54_v22 = vrot.slane %v53_v21, 1 }
 0x14c   :  { %v55_v23 = vadd.f32 %v54_v22, %v53_v21 }
 0x14e   :  { %74 = vpush %v55_v23 }
 0x17f   :  { %s75_s2 = spop %74 }
 0x180   :  { %v57_v24 = vstv %s75_s2 }
 0x181   :  { %59 = vst.msk [vmem:[#allocation4] sm:$0x1] %vm58_vm1, %v57_v24 }
 0x182   :  { %94 = shalt.err (!%p91_p4)
}
 0x183   :  { %s95_s22 = scalar_lea.hbm %s152_s3, 16 }
 0x184   :  { %p96_p5 = scmp.ne.s32.totalorder %s152_s3, %s95_s22  ;;  %p99_p6 = scmp.lt.u32.totalorder %s95_s22, %s152_s3 }
 0x186   :  { %p101_p7 = pnand %p99_p6, %p96_p5 }
 0x188   :  { %104 = shalt.err (!%p101_p7)
}
 0x189   :  { %69 = dma.vmem_to_hbm [thread:$0]  %s67_s1, 16, %s152_s3, [#allocation5]  }
 0x18a   :  { %105 = dma.done.wait [#allocation5], 16  }
 0x18b   :  { %106 = vsyncadd [#allocation5], 4294967280 }
 0x18c   :  { %73 = vsyncpa [#allocation5], 1 }

</bundles_post_ra>
